<compile_context>
chip_gen: v7x
topology: tpu7x:2x2x1
jax: 0.10.0
libtpu: 0.0.40
codegen_flags: <defaults>
</compile_context>

<pallas_src>
import numpy as np
import jax
import jax.numpy as jnp
from jax.experimental import pallas as pl
from jax.experimental.pallas import tpu as pltpu


_TARGET_BLOCK_BYTES = 8 * 1024 * 1024      # per-step input block target
_MIN_GRID_STEPS = 4                        # keep >=4 steps on big tensors
_SPLIT_THRESHOLD_BYTES = 1 * 1024 * 1024   # only force multi-step grids above this


def _vmem_limit_bytes() -> int:
    """Scoped-VMEM limit: 3/4 of physical VMEM, capped at 64 MiB (48 MiB on v7x)."""
    cap = 64 * 1024 * 1024
    try:
        info = pltpu.get_tpu_info()
        cap = int(getattr(info, "vmem_capacity_bytes", cap)) or cap
    except Exception:
        pass
    cap = max(cap, 32 * 1024 * 1024)
    return min((cap * 3) // 4, 64 * 1024 * 1024)


def _delay_reference(x):
    """Plain-XLA 1-step delay along the last (time) axis (fallback path)."""
    zeros = jnp.zeros(x.shape[:-1] + (1,), x.dtype)
    return jnp.concatenate([zeros, x[..., :-1]], axis=-1)


def _make_delay_kernel(T: int, tr: int, R: int, with_count: bool):
    """Kernel over a lane-dense (tr, L) block of the flattened tensor.

    L is a multiple of T, so every block/row boundary is a time-series start:
    the wrapped lane produced by the 1-lane roll lands on a (lane % T == 0)
    position and is zeroed by the mask -> no cross-row / cross-block carry.
    """

    def kernel(x_ref, o_ref, *cnt_refs):
        x = x_ref[...]                                   # (tr, L)
        tl = x.shape[1]
        # 1-step delay: XLU lane rotate (own VLIW slot, no VMEM intermediate).
        shifted = pltpu.roll(x, shift=1, axis=1)
        lane = jax.lax.broadcasted_iota(jnp.int32, (1, tl), 1)
        keep = (lane % T) != 0                           # series starts -> 0
        y = jnp.where(keep, shifted, jnp.zeros_like(shifted))
        o_ref[...] = y
        if with_count:
            cnt_ref = cnt_refs[0]
            # Fused per-block event count (saves a second HBM read of y).
            # Mask rows past R: the ragged last block reads unspecified data.
            row0 = pl.program_id(0) * tr
            row = jax.lax.broadcasted_iota(jnp.int32, (x.shape[0], 1), 0) + row0
            hits = jnp.where(jnp.logical_and(row < R, y > 0),
                             jnp.float32(1.0), jnp.float32(0.0))
            cnt = jnp.sum(hits)                          # <= 2M per block: exact f32
            cnt_ref[...] = jnp.broadcast_to(cnt, cnt_ref.shape)

    return kernel


def _choose_row_tile(R: int, row_bytes: int, sub: int, max_block_bytes: int) -> int:
    """Row tile: ~_TARGET_BLOCK_BYTES per block, multiple of `sub`, and small
    enough that tensors > 1 MiB get >= _MIN_GRID_STEPS grid steps (pipeline
    overlap + v7x dual-TensorCore sharding)."""
    budget = min(_TARGET_BLOCK_BYTES, max_block_bytes)
    rows = max(sub, (budget // max(row_bytes, 1)) // sub * sub)
    if R * row_bytes >= _SPLIT_THRESHOLD_BYTES and R >= _MIN_GRID_STEPS * sub:
        rows = min(rows, max(sub, (R // _MIN_GRID_STEPS) // sub * sub))
    if rows >= R:
        return R                     # single full-extent block
    return rows


def _step_delay(x, want_count: bool = False):
    """Pallas 1-step delay of a time-last tensor (NCT / NCHWT / ...).

    Returns (y, total_count) where total_count is the f32 number of strictly
    positive elements of y when `want_count` and the Pallas path was taken;
    otherwise None (caller computes the rate with plain XLA).
    """
    orig_shape = x.shape
    T = int(orig_shape[-1])
    E = int(np.prod(orig_shape))

    if T <= 1:
        # Delaying a single-timestep signal by 1 zeroes everything.
        return jnp.zeros_like(x), None

    itemsize = jnp.dtype(x.dtype).itemsize
    sub = max(8, 32 // itemsize)              # sublane multiple for this dtype
    L = int(np.lcm(T, 128))                   # lane-dense row length, T | L

    vmem_limit = _vmem_limit_bytes()
    # in + out double-buffered = 4 live blocks; keep headroom for the count
    # output and Mosaic internal scratch.
    max_block_bytes = vmem_limit // 6

    if E % L != 0:
        # TODO(synk): ragged flatten (E not a multiple of lcm(T,128)); fall
        # back to the XLA pad+slice path, which is already at the HBM roofline.
        return _delay_reference(x), None

    R = E // L
    row_bytes = L * itemsize
    if min(R, sub) * row_bytes > max_block_bytes:
        # Even the minimum legal tile would blow the VMEM budget (huge T).
        return _delay_reference(x), None

    tr = _choose_row_tile(R, row_bytes, sub, max_block_bytes)
    num_blocks = pl.cdiv(R, tr)
    grid = (num_blocks,)

    x2 = x.reshape(R, L)                      # layout plumbing: lane-dense slab
    kernel = _make_delay_kernel(T, tr, R, want_count)

    if want_count:
        out_shape = (jax.ShapeDtypeStruct((R, L), x.dtype),
                     jax.ShapeDtypeStruct((num_blocks, 1, 128), jnp.float32))
        out_specs = (pl.BlockSpec((tr, L), lambda i: (i, 0)),
                     pl.BlockSpec((1, 1, 128), lambda i: (i, 0, 0)))
    else:
        out_shape = jax.ShapeDtypeStruct((R, L), x.dtype)
        out_specs = pl.BlockSpec((tr, L), lambda i: (i, 0))

    result = pl.pallas_call(
        kernel,
        out_shape=out_shape,
        grid_spec=pltpu.PrefetchScalarGridSpec(
            num_scalar_prefetch=0,
            grid=grid,
            in_specs=[pl.BlockSpec((tr, L), lambda i: (i, 0))],
            out_specs=out_specs,
        ),
        compiler_params=pltpu.CompilerParams(
            dimension_semantics=("parallel",),   # shards over v7x's 2 TCs
            vmem_limit_bytes=vmem_limit,
        ),
    )(x2)

    if want_count:
        y2, cnt = result
        total = jnp.sum(cnt[:, 0, 0])            # sum of exact per-block partials
        return y2.reshape(orig_shape), total
    return result.reshape(orig_shape), None


def abstract_input_forward(x, *, delay_shift=True, count_log=False):
    """Pallas equivalent of AbstractInput.forward (neuron=None path).

    x : time-last tensor, e.g. (N, C, T) or (N, C, H, W, T).
    Returns the 1-step-delayed tensor, plus mean(y > 0) if count_log=True.
    """
    if delay_shift:
        y, count = _step_delay(x, want_count=count_log)
    else:
        y, count = x, None        # identity: no kernel launch, no HBM pass
    if count_log:
        if count is None:
            rate = jnp.mean((y > 0).astype(jnp.float32))
        else:
            rate = count / jnp.float32(y.size)
        return y, rate
    return y


if __name__ == "__main__":
    key = jax.random.PRNGKey(0)

    # NCHWT: batch=2, channels=4, spatial=16x16, time=8
    N, C, H, W, T = 2, 4, 16, 16, 8
    x = jax.random.normal(key, (N, C, H, W, T), dtype=jnp.float32)

    # Default AbstractInput(): delay_shift=True, count_log=False
    y = jax.block_until_ready(abstract_input_forward(x))
    y_ref = _delay_reference(x)
    assert y.shape == x.shape
    assert jnp.array_equal(y, y_ref), "delay-shift mismatch (NCHWT)"

    # count_log=True variant: also returns mean(y > 0) of the delayed output.
    y2, rate = abstract_input_forward(x, count_log=True)
    jax.block_until_ready((y2, rate))
    assert jnp.array_equal(y2, y_ref), "delay-shift mismatch (count_log path)"
    rate_ref = jnp.mean((y_ref > 0).astype(jnp.float32))
    assert jnp.allclose(rate, rate_ref, atol=1e-6), "event-rate mismatch"

    # NCT format
    x_nct = jax.random.normal(jax.random.PRNGKey(1), (2, 32, 16), jnp.float32)
    y_nct = jax.block_until_ready(abstract_input_forward(x_nct))
    assert jnp.array_equal(y_nct, _delay_reference(x_nct)), "delay-shift mismatch (NCT)"

    # Larger, awkward shape: exercises the cdiv grid (ragged last block) and
    # the fused per-block event count with row masking.
    x_rag = jax.random.normal(jax.random.PRNGKey(2), (2, 4, 54, 76, 8), jnp.float32)
    y_rag, rate_rag = abstract_input_forward(x_rag, count_log=True)
    jax.block_until_ready((y_rag, rate_rag))
    y_rag_ref = _delay_reference(x_rag)
    assert jnp.array_equal(y_rag, y_rag_ref), "delay-shift mismatch (ragged grid)"
    rate_rag_ref = jnp.mean((y_rag_ref > 0).astype(jnp.float32))
    assert jnp.allclose(rate_rag, rate_rag_ref, atol=1e-6), "event-rate mismatch (ragged grid)"

    # delay_shift=False fast path (identity, no kernel)
    y_id = jax.block_until_ready(abstract_input_forward(x, delay_shift=False))
    assert jnp.array_equal(y_id, x), "delay_shift=False should be identity"

    print("KERNEL_OK")
</pallas_src>

<mosaic_0001>
module attributes {stable_mosaic.version = 11 : i64} {
  func.func @kernel(%arg0: i32, %arg1: memref<128x128xf32, #tpu.memory_space<vmem>>, %arg2: memref<128x128xf32, #tpu.memory_space<vmem>>) attributes {dimension_semantics = [#tpu.dimension_semantics<parallel>], iteration_bounds = array<i64: 1>, scalar_prefetch = 0 : i64, scratch_operands = 0 : i64, tpu.core_type = #tpu.core_type<tc>, window_params = [{transform_indices = @transform_0, window_bounds = array<i64: 128, 128>}, {transform_indices = @transform_1, window_bounds = array<i64: 128, 128>}]} {
    %c0 = arith.constant 0 : index
    %c0_0 = arith.constant 0 : index
    %0 = vector.load %arg1[%c0, %c0_0] : memref<128x128xf32, #tpu.memory_space<vmem>>, vector<128x128xf32>
    %c1_i32 = arith.constant 1 : i32
    %1 = tpu.dynamic_rotate %0 by %c1_i32 dim 1 : vector<128x128xf32>, i32 -> vector<128x128xf32>
    %2 = tpu.iota {dimensions = array<i32: 1>} : vector<1x128xi32>
    %c8_i32 = arith.constant 8 : i32
    %c0_i32 = arith.constant 0 : i32
    %3 = arith.cmpi eq, %c8_i32, %c0_i32 : i32
    %c1_i32_1 = arith.constant 1 : i32
    %4 = arith.select %3, %c1_i32_1, %c8_i32 : i32
    %5 = vector.broadcast %4 : i32 to vector<1x128xi32>
    %6 = arith.remsi %2, %5 : vector<1x128xi32>
    %c0_i32_2 = arith.constant 0 : i32
    %7 = vector.broadcast %c0_i32_2 : i32 to vector<1x128xi32>
    %8 = arith.cmpi ne, %6, %7 : vector<1x128xi32>
    %c0_i32_3 = arith.constant 0 : i32
    %9 = vector.broadcast %c0_i32_3 : i32 to vector<1x128xi32>
    %10 = arith.cmpi slt, %6, %9 : vector<1x128xi32>
    %c0_i32_4 = arith.constant 0 : i32
    %11 = arith.cmpi slt, %4, %c0_i32_4 : i32
    %12 = vector.broadcast %11 : i1 to vector<1x128xi1>
    %13 = vector.broadcast %12 : vector<1x128xi1> to vector<1x128xi1>
    %14 = arith.xori %10, %13 : vector<1x128xi1>
    %15 = arith.andi %14, %8 : vector<1x128xi1>
    %16 = vector.broadcast %4 : i32 to vector<1x128xi32>
    %17 = arith.addi %6, %16 : vector<1x128xi32>
    %18 = arith.select %15, %17, %6 : vector<1x128xi1>, vector<1x128xi32>
    %c0_i32_5 = arith.constant 0 : i32
    %19 = vector.broadcast %c0_i32_5 : i32 to vector<1x128xi32>
    %20 = arith.cmpi ne, %18, %19 : vector<1x128xi32>
    %cst = arith.constant 0.000000e+00 : f32
    %21 = vector.broadcast %cst : f32 to vector<128x128xf32>
    %22 = vector.shape_cast %20 : vector<1x128xi1> to vector<1x128xi1>
    %23 = vector.broadcast %22 : vector<1x128xi1> to vector<128x128xi1>
    %24 = arith.select %23, %1, %21 : vector<128x128xi1>, vector<128x128xf32>
    %c0_6 = arith.constant 0 : index
    %c0_7 = arith.constant 0 : index
    %25 = vector.load %arg2[%c0_6, %c0_7] : memref<128x128xf32, #tpu.memory_space<vmem>>, vector<128x128xf32>
    tpu.vector_store %arg2[%c0_6, %c0_7], %24 {strides = array<i32>} : memref<128x128xf32, #tpu.memory_space<vmem>>, vector<128x128xf32>,
    return
  }
  func.func @transform_0(%arg0: i32) -> (i32, i32) {
    %c0_i32 = arith.constant 0 : i32
    %c0_i32_0 = arith.constant 0 : i32
    return %arg0, %c0_i32 : i32, i32
  }
  func.func @transform_1(%arg0: i32) -> (i32, i32) {
    %c0_i32 = arith.constant 0 : i32
    %c0_i32_0 = arith.constant 0 : i32
    return %arg0, %c0_i32 : i32, i32
  }
}

</mosaic_0001>

<bundles_post_ra>
// kernel: tpu_custom_call.1
= control target key start
LH: loop header
LB: loop body
LE: loop exit
PB: predicated region body
PF: predicated region fallthrough
CT: control target
= control target key end

     0   :  { %6 = vsyncpa [#allocation3], 0  ;;  %s271_s0 = inlined_call_operand.hbm [shape: f32[128,128], index: 0, kind: input, shape index: {}]   ;;  %s272_s1 = inlined_call_operand.hbm [shape: f32[128,128], index: 1, kind: output, shape index: {}]  }
   0x1   :  { %7 = vsyncpa [#allocation4], 0  ;;  %s190_s6 = smov [#allocation2]   ;;  %s142_s10 = scalar_lea.hbm %s271_s0, 2048 }
   0x2   :  { %s13_s7 = sshll.u32 %s190_s6, 4  ;;  %p143_p0 = scmp.ne.s32.totalorder %s271_s0, %s142_s10  ;;  %s14_s7 = int_to_ptr.vmem [resolvable:$true] %s13_s7 }
   0x3   :  { %p146_p1 = scmp.lt.u32.totalorder %s142_s10, %s271_s0 }
   0x5   :  { %p148_p2 = pnand %p146_p1, %p143_p0 }
   0x7   :  { %151 = shalt.err (!%p148_p2)
}
   0x8   :  { %s152_s15 = scalar_lea.vmem %s14_s7, 2048  ;;  %p157_p4 = scmp.lt.s32.totalorder %s14_s7, %s14_s7 }
   0x9   :  { %p153_p3 = scmp.ne.s32.totalorder %s14_s7, %s152_s15  ;;  %p158_p5 = scmp.lt.s32.totalorder %s152_s15, %s152_s15 }
   0xb   :  { %p159_p6 = por %p158_p5, %p157_p4 }
   0xd   :  { %p160_p7 = pnand %p159_p6, %p153_p3 }
   0xf   :  { %163 = shalt.err (!%p160_p7)
}
  0x10   :  { %s191_s16 = smov 128   ;;  %s192_s17 = smov 8  }
  0x11   :  { %19 = dma.hbm_to_vmem [thread:$0]  %s271_s0, 2048, %s14_s7, [#allocation3], %s191_s16, %s191_s16, %s192_s17  }
  0x12   :  { %186 = dma.done.wait [#allocation3], 2048  }
  0x13   :  { %187 = vsyncadd [#allocation3], 4294965248  ;;  %v25_v0 = vld [vmem:[#allocation2 + $0x10] sm:$0xff]  ;;  %v23_v1 = vld [vmem:[#allocation2] sm:$0xff]  ;;  %s193_s20 = smov 1   ;;  %v71_v16 = vlaneseq  ;;  %s194_s0 = smov [#allocation5]  }
  0x14   :  { %43 = vrot.lane.b32.xlu1 %v25_v0, %s193_s20  ;;  %39 = vrot.lane.b32.xlu0 %v23_v1, %s193_s20  ;;  %v26_v2 = vld [vmem:[#allocation2 + $0x18] sm:$0xff]  ;;  %v24_v3 = vld [vmem:[#allocation2 + $0x8] sm:$0xff]  ;;  %v27_v5 = vld [vmem:[#allocation2 + $0x20] sm:$0xff]  ;;  %s125_s21 = sshll.u32 %s194_s0, 4  ;;  %s126_s21 = int_to_ptr.vmem [resolvable:$true] %s125_s21 }
  0x15   :  { %v28_v4 = vld [vmem:[#allocation2 + $0x28] sm:$0xff]  ;;  %v30_v6 = vld [vmem:[#allocation2 + $0x38] sm:$0xff]  ;;  %v29_v7 = vld [vmem:[#allocation2 + $0x30] sm:$0xff]  ;;  %v72_v17 = vand.u32 127, %v71_v16  ;;  %s164_s22 = scalar_lea.vmem %s126_s21, 2048  ;;  %p169_p9 = scmp.lt.s32.totalorder %s126_s21, %s126_s21 }
  0x16   :  { %v32_v8 = vld [vmem:[#allocation2 + $0x48] sm:$0xff]  ;;  %v31_v9 = vld [vmem:[#allocation2 + $0x40] sm:$0xff]  ;;  %v34_v10 = vld [vmem:[#allocation2 + $0x58] sm:$0xff]  ;;  %p165_p8 = scmp.ne.s32.totalorder %s126_s21, %s164_s22  ;;  %p170_p10 = scmp.lt.s32.totalorder %s164_s22, %s164_s22 }
  0x17   :  { %v33_v11 = vld [vmem:[#allocation2 + $0x50] sm:$0xff]  ;;  %v36_v12 = vld [vmem:[#allocation2 + $0x68] sm:$0xff]  ;;  %v35_v13 = vld [vmem:[#allocation2 + $0x60] sm:$0xff]  ;;  %v77_v18 = vand.u32 7, %v72_v17 }
  0x18   :  { %45 = vrot.lane.b32.xlu1 %v26_v2, %s193_s20  ;;  %41 = vrot.lane.b32.xlu0 %v24_v3, %s193_s20  ;;  %v38_v14 = vld [vmem:[#allocation2 + $0x78] sm:$0xff]  ;;  %v37_v15 = vld [vmem:[#allocation2 + $0x70] sm:$0xff]  ;;  %p171_p11 = por %p170_p10, %p169_p9 }
  0x19   :  { %vm220_vm0 = vcmp.ne.s32.totalorder %v77_v18, 0 }
  0x1a   :  { %p172_p12 = pnand %p171_p11, %p165_p8 }
  0x1c   :  { %49 = vrot.lane.b32.xlu1 %v28_v4, %s193_s20  ;;  %47 = vrot.lane.b32.xlu0 %v27_v5, %s193_s20 }
  0x20   :  { %53 = vrot.lane.b32.xlu1 %v30_v6, %s193_s20  ;;  %51 = vrot.lane.b32.xlu0 %v29_v7, %s193_s20 }
  0x24   :  { %57 = vrot.lane.b32.xlu1 %v32_v8, %s193_s20  ;;  %55 = vrot.lane.b32.xlu0 %v31_v9, %s193_s20 }
  0x28   :  { %61 = vrot.lane.b32.xlu1 %v34_v10, %s193_s20  ;;  %59 = vrot.lane.b32.xlu0 %v33_v11, %s193_s20 }
  0x2c   :  { %65 = vrot.lane.b32.xlu1 %v36_v12, %s193_s20  ;;  %63 = vrot.lane.b32.xlu0 %v35_v13, %s193_s20 }
  0x30   :  { %69 = vrot.lane.b32.xlu1 %v38_v14, %s193_s20  ;;  %67 = vrot.lane.b32.xlu0 %v37_v15, %s193_s20 }
  0x86   :  { %v44_v20 = vpop.permute.xlu1 %43  ;;  %v40_v21 = vpop.permute.xlu0 %39 }
  0x87   :  { %v90_v22 = vsel %vm220_vm0, %v44_v20, 0.0  ;;  %v88_v23 = vsel %vm220_vm0, %v40_v21, 0.0 }
  0x88   :  { %106 = vst [vmem:[#allocation5 + $0x10] sm:$0xff] %v90_v22  ;;  %104 = vst [vmem:[#allocation5] sm:$0xff] %v88_v23 }
  0x8a   :  { %v46_v24 = vpop.permute.xlu1 %45  ;;  %v42_v25 = vpop.permute.xlu0 %41 }
  0x8b   :  { %v91_v26 = vsel %vm220_vm0, %v46_v24, 0.0  ;;  %v89_v27 = vsel %vm220_vm0, %v42_v25, 0.0 }
  0x8c   :  { %107 = vst [vmem:[#allocation5 + $0x18] sm:$0xff] %v91_v26  ;;  %105 = vst [vmem:[#allocation5 + $0x8] sm:$0xff] %v89_v27 }
  0x8e   :  { %v50_v28 = vpop.permute.xlu1 %49  ;;  %v48_v29 = vpop.permute.xlu0 %47 }
  0x8f   :  { %v93_v30 = vsel %vm220_vm0, %v50_v28, 0.0  ;;  %v92_v31 = vsel %vm220_vm0, %v48_v29, 0.0 }
  0x90   :  { %109 = vst [vmem:[#allocation5 + $0x28] sm:$0xff] %v93_v30  ;;  %108 = vst [vmem:[#allocation5 + $0x20] sm:$0xff] %v92_v31 }
  0x92   :  { %v54_v32 = vpop.permute.xlu1 %53  ;;  %v52_v33 = vpop.permute.xlu0 %51 }
  0x93   :  { %v95_v34 = vsel %vm220_vm0, %v54_v32, 0.0  ;;  %v94_v35 = vsel %vm220_vm0, %v52_v33, 0.0 }
  0x94   :  { %111 = vst [vmem:[#allocation5 + $0x38] sm:$0xff] %v95_v34  ;;  %110 = vst [vmem:[#allocation5 + $0x30] sm:$0xff] %v94_v35 }
  0x96   :  { %v58_v36 = vpop.permute.xlu1 %57  ;;  %v56_v37 = vpop.permute.xlu0 %55 }
  0x97   :  { %v97_v38 = vsel %vm220_vm0, %v58_v36, 0.0  ;;  %v96_v39 = vsel %vm220_vm0, %v56_v37, 0.0 }
  0x98   :  { %113 = vst [vmem:[#allocation5 + $0x48] sm:$0xff] %v97_v38  ;;  %112 = vst [vmem:[#allocation5 + $0x40] sm:$0xff] %v96_v39 }
  0x9a   :  { %v62_v40 = vpop.permute.xlu1 %61  ;;  %v60_v41 = vpop.permute.xlu0 %59 }
  0x9b   :  { %v99_v42 = vsel %vm220_vm0, %v62_v40, 0.0  ;;  %v98_v43 = vsel %vm220_vm0, %v60_v41, 0.0 }
  0x9c   :  { %115 = vst [vmem:[#allocation5 + $0x58] sm:$0xff] %v99_v42  ;;  %114 = vst [vmem:[#allocation5 + $0x50] sm:$0xff] %v98_v43 }
  0x9e   :  { %v66_v44 = vpop.permute.xlu1 %65  ;;  %v64_v45 = vpop.permute.xlu0 %63 }
  0x9f   :  { %v101_v46 = vsel %vm220_vm0, %v66_v44, 0.0  ;;  %v100_v47 = vsel %vm220_vm0, %v64_v45, 0.0 }
  0xa0   :  { %117 = vst [vmem:[#allocation5 + $0x68] sm:$0xff] %v101_v46  ;;  %116 = vst [vmem:[#allocation5 + $0x60] sm:$0xff] %v100_v47 }
  0xa2   :  { %v70_v48 = vpop.permute.xlu1 %69  ;;  %v68_v49 = vpop.permute.xlu0 %67 }
  0xa3   :  { %v103_v50 = vsel %vm220_vm0, %v70_v48, 0.0  ;;  %v102_v51 = vsel %vm220_vm0, %v68_v49, 0.0 }
  0xa4   :  { %119 = vst [vmem:[#allocation5 + $0x78] sm:$0xff] %v103_v50  ;;  %118 = vst [vmem:[#allocation5 + $0x70] sm:$0xff] %v102_v51 }
  0xa5   :  { %175 = shalt.err (!%p172_p12)
}
  0xa6   :  { %s176_s25 = scalar_lea.hbm %s272_s1, 2048 }
  0xa7   :  { %p177_p13 = scmp.ne.s32.totalorder %s272_s1, %s176_s25  ;;  %p180_p0 = scmp.lt.u32.totalorder %s176_s25, %s272_s1 }
  0xa9   :  { %p182_p1 = pnand %p180_p0, %p177_p13 }
  0xab   :  { %185 = shalt.err (!%p182_p1)
}
  0xac   :  { %131 = dma.vmem_to_hbm [thread:$0]  %s126_s21, 2048, %s272_s1, [#allocation4], %s191_s16, %s191_s16, %s192_s17  }
  0xad   :  { %188 = dma.done.wait [#allocation4], 2048  }
  0xae   :  { %189 = vsyncadd [#allocation4], 4294965248 }
  0xaf   :  { %135 = vsyncpa [#allocation3], 1 }
  0xb0   :  { %136 = vsyncpa [#allocation4], 1 }

</bundles_post_ra>
